<compile_context>
chip_gen: v5e
topology: v5e:2x2
jax: 0.10.0
libtpu: 0.0.40
codegen_flags: <defaults>
</compile_context>

<pallas_src>
import math

import jax
import jax.numpy as jnp
from jax.experimental import pallas as pl
from jax.experimental.pallas import tpu as pltpu


def _st_embed_kernel(x_ref, wxy_ref, rfreq_ref, wt_ref, phase_ref, bias_ref,
                     o_ref):
    # x_ref    : (TM, 3*fold)   natural folded layout [x0,y0,t0, x1,y1,t1, ...]
    # wxy_ref  : (3*fold, fold*D)  block-diag spatial weight (t rows zero)
    # rfreq_ref: (3*fold, 8*fold)  block-diag "pick-t * angular-freq" matrix
    # wt_ref   : (8*fold, fold*D)  block-diag temporal weight
    # phase_ref: (1, 8*fold)       [0,0,0,0, pi/2 x4] tiled per group
    # bias_ref : (1, fold*D)       concat(s_bias, t_bias) tiled per group
    # o_ref    : (TM, fold*D)
    x = x_ref[...]
    ang = (jnp.dot(x, rfreq_ref[...], preferred_element_type=jnp.float32)
           + phase_ref[...])                               # (TM, 8*fold)
    tfeat = jnp.sin(ang)                                   # one batched sin
    out = (jnp.dot(x, wxy_ref[...], preferred_element_type=jnp.float32)
           + jnp.dot(tfeat, wt_ref[...], preferred_element_type=jnp.float32)
           + bias_ref[...])                                # (TM, fold*D)
    o_ref[...] = out.astype(o_ref.dtype)                   # single dense store


def linear_st_embedding(s_t, s_w, s_b, t_w, t_b, *, tile_m=8192,
                        out_dtype=jnp.float32):
    """s_t: (B, L, 3) float32.
    s_w: (2, s_dim), s_b: (s_dim,), t_w: (8, t_dim), t_b: (t_dim,)
    Returns (B, L, s_dim + t_dim) in `out_dtype` (float32 matches the module;
    bfloat16 halves the dominant HBM write traffic)."""
    assert s_t.ndim == 3 and s_t.shape[2] == 3
    B, L, _ = s_t.shape
    s_dim = s_w.shape[1]
    t_dim = t_w.shape[1]
    D = s_dim + t_dim
    M = B * L
    f32 = jnp.float32

    # Smallest fold making fold*D a multiple of 128 (lane-dense output block,
    # works for any D, not only divisors of 128).
    fold = 128 // math.gcd(D, 128)

    # Folded rows per grid step: multiple of 8 sublanes, clipped for tiny M.
    m_f_total = pl.cdiv(M, fold)
    tm_f = max(8, (tile_m // fold // 8) * 8)
    tm_f = min(tm_f, pl.cdiv(m_f_total, 8) * 8)
    M_padf = pl.cdiv(m_f_total, tm_f) * tm_f
    M_pad = M_padf * fold

    # Host prep: pad + free row-major reshape only (no column relayout).
    flat = s_t.reshape(M, 3).astype(f32)
    if M_pad != M:
        flat = jnp.pad(flat, ((0, M_pad - M), (0, 0)))   # zero rows, sliced off
    x_folded = flat.reshape(M_padf, 3 * fold)

    # Temporal feature tables.
    period = jnp.asarray([365.0, 30.5, 7.0, 1.0], f32) * 24.0
    freq8 = jnp.tile((2.0 * math.pi) / period, 2)                      # (8,)
    phase8 = jnp.concatenate(
        [jnp.zeros((4,), f32), jnp.full((4,), math.pi / 2, f32)])      # (8,)

    # Per-group building blocks, expanded to block-diagonal folded weights.
    sw3 = jnp.zeros((3, D), f32).at[0:2, 0:s_dim].set(s_w.astype(f32))
    tw8 = jnp.zeros((8, D), f32).at[:, s_dim:D].set(t_w.astype(f32))
    rf3 = jnp.zeros((3, 8), f32).at[2, :].set(freq8)
    eye_f = jnp.eye(fold, dtype=f32)
    wxy = jnp.kron(eye_f, sw3)        # (3*fold, fold*D)
    wt = jnp.kron(eye_f, tw8)         # (8*fold, fold*D)
    rfreq = jnp.kron(eye_f, rf3)      # (3*fold, 8*fold)
    phase = jnp.tile(phase8, fold).reshape(1, 8 * fold)
    bias = jnp.tile(
        jnp.concatenate([s_b.astype(f32), t_b.astype(f32)]), fold
    ).reshape(1, fold * D)

    # Scoped-VMEM budget: double-buffered input (lane-padded to 128) + output
    # blocks + small resident params.  Cap at 48 MiB (safe on v5e/v6e/v7x).
    lane_pad = lambda n: pl.cdiv(n, 128) * 128
    out_itemsize = jnp.dtype(out_dtype).itemsize
    vmem_need = 2 * (tm_f * lane_pad(3 * fold) * 4
                     + tm_f * fold * D * out_itemsize) + (2 << 20)
    vmem_limit = int(min(max(vmem_need, 16 << 20), 48 << 20))

    grid = (M_padf // tm_f,)

    out = pl.pallas_call(
        _st_embed_kernel,
        out_shape=jax.ShapeDtypeStruct((M_padf, fold * D), out_dtype),
        grid_spec=pltpu.PrefetchScalarGridSpec(
            num_scalar_prefetch=0,
            grid=grid,
            in_specs=[
                pl.BlockSpec((tm_f, 3 * fold), lambda i: (i, 0)),      # rows
                pl.BlockSpec((3 * fold, fold * D), lambda i: (0, 0)),  # Wxy
                pl.BlockSpec((3 * fold, 8 * fold), lambda i: (0, 0)),  # Rfreq
                pl.BlockSpec((8 * fold, fold * D), lambda i: (0, 0)),  # Wt
                pl.BlockSpec((1, 8 * fold), lambda i: (0, 0)),         # phase
                pl.BlockSpec((1, fold * D), lambda i: (0, 0)),         # bias
            ],
            out_specs=pl.BlockSpec((tm_f, fold * D), lambda i: (i, 0)),
        ),
        compiler_params=pltpu.CompilerParams(
            dimension_semantics=("parallel",),
            vmem_limit_bytes=vmem_limit),
    )(x_folded, wxy, rfreq, wt, phase, bias)

    # Padded tail rows hold bias-valued garbage; they are sliced off here.
    return out.reshape(M_pad, D)[:M].reshape(B, L, D)


def _reference(s_t, s_w, s_b, t_w, t_b):
    """Pure-JAX reference matching the PyTorch forward."""
    period = jnp.asarray([365.0, 30.5, 7.0, 1.0], jnp.float32) * 24.0
    s = s_t[:, :, :2]
    t = s_t[:, :, 2:3]
    ang = 2.0 * math.pi * t * (1.0 / period.reshape(1, 1, 4))
    t_feat = jnp.concatenate([jnp.sin(ang), jnp.cos(ang)], axis=-1)
    s_emb = jnp.einsum("blc,cd->bld", s, s_w) + s_b
    t_emb = jnp.einsum("blc,cd->bld", t_feat, t_w) + t_b
    return jnp.concatenate([s_emb, t_emb], axis=-1)


def _make_inputs(key, B, L, s_embed_dim, t_embed_dim):
    k1, k2, k3, k4, k5, k6 = jax.random.split(key, 6)
    sb_bound = 1.0 / math.sqrt(2.0)
    tb_bound = 1.0 / math.sqrt(8.0)
    s_w = jax.random.uniform(k1, (2, s_embed_dim), jnp.float32, -sb_bound, sb_bound)
    s_b = jax.random.uniform(k2, (s_embed_dim,), jnp.float32, -sb_bound, sb_bound)
    t_w = jax.random.uniform(k3, (8, t_embed_dim), jnp.float32, -tb_bound, tb_bound)
    t_b = jax.random.uniform(k4, (t_embed_dim,), jnp.float32, -tb_bound, tb_bound)
    xy = jax.random.uniform(k5, (B, L, 2), jnp.float32, -1.0, 1.0)
    hrs = jax.random.uniform(k6, (B, L, 1), jnp.float32, 0.0, 720.0)
    s_t = jnp.concatenate([xy, hrs], axis=-1)   # (B, L, 3)
    return s_t, s_w, s_b, t_w, t_b


if __name__ == "__main__":
    key = jax.random.PRNGKey(0)

    # Small shape consistent with the module.
    B, L = 2, 8
    s_embed_dim, t_embed_dim = 16, 16
    s_t, s_w, s_b, t_w, t_b = _make_inputs(key, B, L, s_embed_dim, t_embed_dim)

    out = linear_st_embedding(s_t, s_w, s_b, t_w, t_b)
    out = jax.block_until_ready(out)
    ref = _reference(s_t, s_w, s_b, t_w, t_b)
    assert out.shape == (B, L, s_embed_dim + t_embed_dim), out.shape
    # cos via sin(x+pi/2) and pre-multiplied 2*pi/P differ from the reference
    # at the ~1e-4 level for large-radian f32 angles.
    assert jnp.allclose(out, ref, atol=2e-3, rtol=2e-3), \
        float(jnp.max(jnp.abs(out - ref)))

    # Second check: multi-step grid + non-multiple row count (exercises the
    # large-tile pipelined path and the padded-tail slicing).
    B2, L2 = 2, 5000
    s_t2, s_w2, s_b2, t_w2, t_b2 = _make_inputs(
        jax.random.fold_in(key, 1), B2, L2, s_embed_dim, t_embed_dim)
    out2 = linear_st_embedding(s_t2, s_w2, s_b2, t_w2, t_b2)
    out2 = jax.block_until_ready(out2)
    ref2 = _reference(s_t2, s_w2, s_b2, t_w2, t_b2)
    assert out2.shape == (B2, L2, s_embed_dim + t_embed_dim), out2.shape
    assert jnp.allclose(out2, ref2, atol=2e-3, rtol=2e-3), \
        float(jnp.max(jnp.abs(out2 - ref2)))

    print("KERNEL_OK")
</pallas_src>

<mosaic_0001>
module attributes {stable_mosaic.version = 11 : i64} {
  func.func @_st_embed_kernel(%arg0: i32, %arg1: memref<8x12xf32, #tpu.memory_space<vmem>>, %arg2: memref<12x128xf32, #tpu.memory_space<vmem>>, %arg3: memref<12x32xf32, #tpu.memory_space<vmem>>, %arg4: memref<32x128xf32, #tpu.memory_space<vmem>>, %arg5: memref<1x32xf32, #tpu.memory_space<vmem>>, %arg6: memref<1x128xf32, #tpu.memory_space<vmem>>, %arg7: memref<8x128xf32, #tpu.memory_space<vmem>>) attributes {dimension_semantics = [#tpu.dimension_semantics<parallel>], iteration_bounds = array<i64: 1>, scalar_prefetch = 0 : i64, scratch_operands = 0 : i64, tpu.core_type = #tpu.core_type<tc>, window_params = [{transform_indices = @transform_0, window_bounds = array<i64: 8, 12>}, {pipeline_mode = #tpu.pipeline_mode<synchronous>, transform_indices = @transform_1, window_bounds = array<i64: 12, 128>}, {pipeline_mode = #tpu.pipeline_mode<synchronous>, transform_indices = @transform_2, window_bounds = array<i64: 12, 32>}, {pipeline_mode = #tpu.pipeline_mode<synchronous>, transform_indices = @transform_3, window_bounds = array<i64: 32, 128>}, {pipeline_mode = #tpu.pipeline_mode<synchronous>, transform_indices = @transform_4, window_bounds = array<i64: 1, 32>}, {pipeline_mode = #tpu.pipeline_mode<synchronous>, transform_indices = @transform_5, window_bounds = array<i64: 1, 128>}, {transform_indices = @transform_6, window_bounds = array<i64: 8, 128>}]} {
    %c0 = arith.constant 0 : index
    %c0_0 = arith.constant 0 : index
    %0 = vector.load %arg1[%c0, %c0_0] : memref<8x12xf32, #tpu.memory_space<vmem>>, vector<8x12xf32>
    %c0_1 = arith.constant 0 : index
    %c0_2 = arith.constant 0 : index
    %1 = vector.load %arg3[%c0_1, %c0_2] : memref<12x32xf32, #tpu.memory_space<vmem>>, vector<12x32xf32>
    %cst = arith.constant dense<0.000000e+00> : vector<8x32xf32>
    %2 = tpu.matmul %0, %1, %cst {dimension_numbers = #tpu.dot_dimension_numbers<[1], [0], [0], [1], [0, 0, 1, 1], [], []>} : vector<8x12xf32>, vector<12x32xf32>, vector<8x32xf32> -> vector<8x32xf32>
    %c0_3 = arith.constant 0 : index
    %c0_4 = arith.constant 0 : index
    %3 = vector.load %arg5[%c0_3, %c0_4] : memref<1x32xf32, #tpu.memory_space<vmem>>, vector<1x32xf32>
    %4 = vector.broadcast %3 : vector<1x32xf32> to vector<8x32xf32>
    %5 = arith.addf %2, %4 : vector<8x32xf32>
    %6 = math.sin %5 : vector<8x32xf32>
    %c0_5 = arith.constant 0 : index
    %c0_6 = arith.constant 0 : index
    %7 = vector.load %arg2[%c0_5, %c0_6] : memref<12x128xf32, #tpu.memory_space<vmem>>, vector<12x128xf32>
    %cst_7 = arith.constant dense<0.000000e+00> : vector<8x128xf32>
    %8 = tpu.matmul %0, %7, %cst_7 {dimension_numbers = #tpu.dot_dimension_numbers<[1], [0], [0], [1], [0, 0, 1, 1], [], []>} : vector<8x12xf32>, vector<12x128xf32>, vector<8x128xf32> -> vector<8x128xf32>
    %c0_8 = arith.constant 0 : index
    %c0_9 = arith.constant 0 : index
    %9 = vector.load %arg4[%c0_8, %c0_9] : memref<32x128xf32, #tpu.memory_space<vmem>>, vector<32x128xf32>
    %cst_10 = arith.constant dense<0.000000e+00> : vector<8x128xf32>
    %10 = tpu.matmul %6, %9, %cst_10 {dimension_numbers = #tpu.dot_dimension_numbers<[1], [0], [0], [1], [0, 0, 1, 1], [], []>} : vector<8x32xf32>, vector<32x128xf32>, vector<8x128xf32> -> vector<8x128xf32>
    %11 = arith.addf %8, %10 : vector<8x128xf32>
    %c0_11 = arith.constant 0 : index
    %c0_12 = arith.constant 0 : index
    %12 = vector.load %arg6[%c0_11, %c0_12] : memref<1x128xf32, #tpu.memory_space<vmem>>, vector<1x128xf32>
    %13 = vector.broadcast %12 : vector<1x128xf32> to vector<8x128xf32>
    %14 = arith.addf %11, %13 : vector<8x128xf32>
    %c0_13 = arith.constant 0 : index
    %c0_14 = arith.constant 0 : index
    %15 = vector.load %arg7[%c0_13, %c0_14] : memref<8x128xf32, #tpu.memory_space<vmem>>, vector<8x128xf32>
    tpu.vector_store %arg7[%c0_13, %c0_14], %14 {strides = array<i32>} : memref<8x128xf32, #tpu.memory_space<vmem>>, vector<8x128xf32>,
    return
  }
  func.func @transform_0(%arg0: i32) -> (i32, i32) {
    %c0_i32 = arith.constant 0 : i32
    %c0_i32_0 = arith.constant 0 : i32
    return %arg0, %c0_i32 : i32, i32
  }
  func.func @transform_1(%arg0: i32) -> (i32, i32) {
    %c0_i32 = arith.constant 0 : i32
    %c0_i32_0 = arith.constant 0 : i32
    %c0_i32_1 = arith.constant 0 : i32
    return %c0_i32, %c0_i32_0 : i32, i32
  }
  func.func @transform_2(%arg0: i32) -> (i32, i32) {
    %c0_i32 = arith.constant 0 : i32
    %c0_i32_0 = arith.constant 0 : i32
    %c0_i32_1 = arith.constant 0 : i32
    return %c0_i32, %c0_i32_0 : i32, i32
  }
  func.func @transform_3(%arg0: i32) -> (i32, i32) {
    %c0_i32 = arith.constant 0 : i32
    %c0_i32_0 = arith.constant 0 : i32
    %c0_i32_1 = arith.constant 0 : i32
    return %c0_i32, %c0_i32_0 : i32, i32
  }
  func.func @transform_4(%arg0: i32) -> (i32, i32) {
    %c0_i32 = arith.constant 0 : i32
    %c0_i32_0 = arith.constant 0 : i32
    %c0_i32_1 = arith.constant 0 : i32
    return %c0_i32, %c0_i32_0 : i32, i32
  }
  func.func @transform_5(%arg0: i32) -> (i32, i32) {
    %c0_i32 = arith.constant 0 : i32
    %c0_i32_0 = arith.constant 0 : i32
    %c0_i32_1 = arith.constant 0 : i32
    return %c0_i32, %c0_i32_0 : i32, i32
  }
  func.func @transform_6(%arg0: i32) -> (i32, i32) {
    %c0_i32 = arith.constant 0 : i32
    %c0_i32_0 = arith.constant 0 : i32
    return %arg0, %c0_i32 : i32, i32
  }
}

</mosaic_0001>

<bundles_post_ra>
// kernel: tpu_custom_call.1
= control target key start
LH: loop header
LB: loop body
LE: loop exit
PB: predicated region body
PF: predicated region fallthrough
CT: control target
= control target key end

     0   :  { %11 = vsyncpa [#allocation3], 0  ;;  %s629_s0 = inlined_call_operand.hbm [shape: f32[8,12], index: 0, kind: input, shape index: {}]   ;;  %s630_s1 = inlined_call_operand.hbm [shape: f32[12,128], index: 1, kind: input, shape index: {}]   ;;  %s631_s2 = inlined_call_operand.hbm [shape: f32[12,32], index: 2, kind: input, shape index: {}]   ;;  %s632_s3 = inlined_call_operand.hbm [shape: f32[32,128], index: 3, kind: input, shape index: {}]   ;;  %s633_s4 = inlined_call_operand.vmem [shape: f32[1,32], index: 4, kind: input, shape index: {}]   ;;  %s634_s5 = inlined_call_operand.vmem [shape: f32[1,128], index: 5, kind: input, shape index: {}]   ;;  %s635_s6 = inlined_call_operand.hbm [shape: f32[8,128], index: 6, kind: output, shape index: {}]  }
   0x1   :  { %12 = vsyncpa [#allocation6], 0 }
   0x2   :  { %13 = vsyncpa [#allocation9], 0  ;;  %s30_s23 = sshll.u32 %s630_s1, 4  ;;  %s31_s23 = int_to_ptr.hbm [resolvable:$true] %s30_s23 }
   0x3   :  { %14 = vsyncpa [#allocation4], 0  ;;  %s505_s24 = smov [#allocation5]   ;;  %s20_s28 = sshll.u32 %s629_s0, 4  ;;  %s21_s28 = int_to_ptr.hbm [resolvable:$true] %s20_s28 }
   0x4   :  { %s32_s25 = sshll.u32 %s505_s24, 4  ;;  %s506_s29 = smov 128   ;;  %s33_s25 = int_to_ptr.vmem [resolvable:$true] %s32_s25 }
   0x5   :  { %s507_s30 = smov 8   ;;  %s508_s7 = smov [#allocation2]  }
   0x6   :  { %38 = dma.hbm_to_vmem [thread:$0]  %s31_s23, 256, %s33_s25, [#allocation6], %s506_s29, %s506_s29, %s507_s30  }
   0x7   :  { %s22_s8 = sshll.u32 %s508_s7, 4  ;;  %s43_s11 = sshll.u32 %s631_s2, 4  ;;  %s23_s8 = int_to_ptr.vmem [resolvable:$true] %s22_s8  ;;  %s44_s11 = int_to_ptr.hbm [resolvable:$true] %s43_s11 }
   0x8   :  { %25 = dma.hbm_to_vmem [thread:$0]  %s21_s28, 128, %s23_s8, [#allocation3]  }
   0x9   :  { %s56_s13 = sshll.u32 %s632_s3, 4  ;;  %s509_s14 = smov [#allocation7]   ;;  %s57_s13 = int_to_ptr.hbm [resolvable:$true] %s56_s13 }
   0xa   :  { %s45_s15 = sshll.u32 %s509_s14, 4  ;;  %s510_s0 = smov [#allocation8]   ;;  %s46_s15 = int_to_ptr.vmem [resolvable:$true] %s45_s15 }
   0xb   :  { %51 = dma.hbm_to_vmem [thread:$0]  %s44_s11, 256, %s46_s15, [#allocation6], %s506_s29, %s506_s29, %s507_s30  }
   0xc   :  { %s58_s16 = sshll.u32 %s510_s0, 4  ;;  %s59_s16 = int_to_ptr.vmem [resolvable:$true] %s58_s16 }
   0xd   :  { %64 = dma.hbm_to_vmem [thread:$0]  %s57_s13, 512, %s59_s16, [#allocation9], %s506_s29, %s506_s29, %s507_s30  }
   0xe   :  { %497 = dma.done.wait [#allocation3], 128  }
   0xf   :  { %498 = vsyncadd [#allocation3], 4294967168 }
  0x10   :  { %499 = dma.done.wait [#allocation6], 512  }
  0x11   :  { %500 = vsyncadd [#allocation6], 4294966784 }
  0x12   :  { %501 = dma.done.wait [#allocation9], 512  }
  0x13   :  { %502 = vsyncadd [#allocation9], 4294966784  ;;  %vm96_vm0 = vcmask 1043456   ;;  %v87_v0 = vld [vmem:[#allocation7 + $0x8] sm:$0xf]  ;;  %v86_v1 = vld [vmem:[#allocation7] sm:$0xff] }
  0x14   :  { %353 = vmatpush.msk.msra.mxu0 %vm96_vm0, %v87_v0  ;;  %v85_v2 = vld [vmem:[#allocation2] sm:$0xff]  ;;  %vm92_vm1 = vcmask 97280   ;;  %v276_v3 = vld [vmem:[#allocation5 + $0x8] sm:$0xf]  ;;  %v275_v5 = vld [vmem:[#allocation5] sm:$0xff]  ;;  %s518_s18 = smov [#allocation10]  }
  0x15   :  { %v280_v4 = vld [vmem:[#allocation8 + $0x18] sm:$0xff]  ;;  %359 = vmatpush.msk.msra.mxu2 %vm96_vm0, %v276_v3  ;;  %v279_v6 = vld [vmem:[#allocation8 + $0x10] sm:$0xff]  ;;  %v278_v7 = vld [vmem:[#allocation8 + $0x8] sm:$0xff]  ;;  %v511_v23 = vmov 683565275   ;;  %s339_s19 = sshll.u32 %s518_s18, 4  ;;  %s340_s19 = int_to_ptr.vmem [resolvable:$true] %s339_s19 }
  0x16   :  { %115 = vmatpush.msra.mxu0 %v86_v1  ;;  %297 = vmatpush.msra.mxu1 %v280_v4  ;;  %v277_v8 = vld [vmem:[#allocation8] sm:$0xff]  ;;  %v375_v9 = vld [vmem:[%s633_s4] ss:$0 sm:$0xff]  ;;  %v512_v25 = vmov 2475754826   ;;  %s341_s22 = sshll.u32 %s635_s6, 4  ;;  %s342_s22 = int_to_ptr.hbm [resolvable:$true] %s341_s22 }
  0x17   :  { %354 = vmatmul.msk.f32.vlgmr.msra.gmra.mxu0 %vm92_vm1, %v85_v2  ;;  %323 = vmatpush.msra.mxu2 %v275_v5  ;;  %v513_v27 = vmov 2131351028   ;;  %v514_v29 = vmov 2102212464   ;;  %v515_v34 = vmov 920167782  }
  0x18   :  { %298 = vmatpush.msra.mxu1 %v279_v6  ;;  %360 = vmatmul.msk.f32.vlgmr.msra.gmra.mxu2 %vm92_vm1, %v85_v2  ;;  %v516_v37 = vmov 1326507024  }
  0x1a   :  { %299 = vmatpush.msra.mxu1 %v278_v7 }
  0x1c   :  { %300 = vmatpush.msra.mxu1 %v277_v8 }
  0x94   :  { %v117_v10 = vpop.f32.mrf.mxu0 }
  0x95   :  { %v569_v11 = vadd.f32 %v375_v9, %v117_v10  ;;  %v517_v9 = vmov 0  }
  0x97   :  { %v123_v12 = vand.u32 2139095040, %v569_v11  ;;  %v120_v14 = vand.u32 2147483647, %v569_v11  ;;  %vm122_vm14 = vcmp.lt.s32.totalorder %v569_v11, 0 }
  0x99   :  { %v124_v13 = vshrl.u32 %v123_v12, 23  ;;  %v127_v17 = vand.u32 8388607, %v120_v14  ;;  %vm121_vm15 = vcmp.le.f32.partialorder %v120_v14, 0.7853982 }
  0x9b   :  { %v355_v15 = vadd.s32 4294967169, %v124_v13  ;;  %v128_v20 = vor.u32 8388608, %v127_v17 }
  0x9d   :  { %v130_v16 = vadd.s32 1, %v355_v15  ;;  %v584_v39 = vshll.u32 %v128_v20, 8 }
  0x9f   :  { %vm131_vm2 = vcmp.gt.s32.totalorder %v130_v16, 0  ;;  %v169_v51 = vand.u32 65535, %v584_v39  ;;  %v170_v53 = vshrl.u32 %v584_v39, 16 }
  0xa0   :  { %v132_v18 = vsel %vm131_vm2, %v130_v16, 0 }
  0xa1   :  { %v134_v19 = vand.u32 31, %v132_v18  ;;  %v575_v21 = vshrl.u32 %v132_v18, 5 }
  0xa3   :  { %v577_v22 = vsub.s32 32, %v134_v19  ;;  %v137_v24 = vshll.u32 %v511_v23, %v134_v19  ;;  %v140_v26 = vshll.u32 %v512_v25, %v134_v19  ;;  %v143_v28 = vshll.u32 %v513_v27, %v134_v19 }
  0xa4   :  { %v146_v30 = vshll.u32 %v514_v29, %v134_v19  ;;  %v149_v36 = vshll.u32 %v515_v34, %v134_v19  ;;  %vm152_vm3 = vcmp.lt.s32.totalorder %v575_v21, 1  ;;  %vm155_vm4 = vcmp.lt.s32.totalorder %v575_v21, 4 }
  0xa5   :  { %v138_v31 = vshrl.u32 %v512_v25, %v577_v22  ;;  %v141_v32 = vshrl.u32 %v513_v27, %v577_v22  ;;  %v144_v33 = vshrl.u32 %v514_v29, %v577_v22  ;;  %v147_v35 = vshrl.u32 %v515_v34, %v577_v22 }
  0xa6   :  { %v150_v38 = vshrl.u32 %v516_v37, %v577_v22  ;;  %vm154_vm5 = vcmp.lt.s32.totalorder %v575_v21, 3  ;;  %vm153_vm6 = vcmp.lt.s32.totalorder %v575_v21, 2  ;;  %v136_v16 = vshrl.u32 %v511_v23, %v577_v22 }
  0xa7   :  { %v139_v40 = vor.u32 %v138_v31, %v137_v24  ;;  %v142_v41 = vor.u32 %v141_v32, %v140_v26  ;;  %v145_v42 = vor.u32 %v144_v33, %v143_v28  ;;  %v148_v43 = vor.u32 %v147_v35, %v146_v30 }
  0xa8   :  { %v151_v44 = vor.u32 %v150_v38, %v149_v36 }
  0xa9   :  { %v160_v45 = vsel %vm152_vm3, %v139_v40, %v142_v41  ;;  %v161_v46 = vsel %vm155_vm4, %v148_v43, 920167782  ;;  %v164_v47 = vsel %vm152_vm3, %v142_v41, %v145_v42  ;;  %v157_v12 = vsel %vm155_vm4, %v145_v42, 2102212464 }
  0xaa   :  { %v162_v48 = vsel %vm154_vm5, %v145_v42, %v161_v46  ;;  %v165_v49 = vsel %vm155_vm4, %v151_v44, 1326507024  ;;  %v156_v25 = vsel %vm152_vm3, %v136_v16, %v139_v40  ;;  %v158_v26 = vsel %vm154_vm5, %v142_v41, %v157_v12 }
  0xab   :  { %v166_v50 = vsel %vm154_vm5, %v148_v43, %v165_v49  ;;  %v163_v52 = vsel %vm153_vm6, %v160_v45, %v162_v48  ;;  %v159_v22 = vsel %vm153_vm6, %v156_v25, %v158_v26  ;;  %vm281_vm3 = vcmask 261120  }
  0xac   :  { %v167_v54 = vsel %vm153_vm6, %v164_v47, %v166_v50  ;;  %v193_v55 = vand.u32 65535, %v163_v52  ;;  %v194_v56 = vshrl.u32 %v163_v52, 16  ;;  %v213_v36 = vmul.u32 %v584_v39, %v159_v22 }
  0xad   :  { %v171_v57 = vand.u32 65535, %v167_v54  ;;  %v172_v58 = vshrl.u32 %v167_v54, 16  ;;  %vm263_vm4 = vweird.f32 %v569_v11 }
  0xae   :  { %v196_v59 = vmul.u32 %v194_v56, %v169_v51  ;;  %v197_v60 = vmul.u32 %v193_v55, %v170_v53  ;;  %v195_v63 = vmul.u32 %v193_v55, %v169_v51  ;;  %v198_v3 = vmul.u32 %v194_v56, %v170_v53 }
  0xaf   :  { %v174_v61 = vmul.u32 %v172_v58, %v169_v51  ;;  %v175_v62 = vmul.u32 %v171_v57, %v170_v53  ;;  %v173_v1 = vmul.u32 %v171_v57, %v169_v51  ;;  %v176_v4 = vmul.u32 %v172_v58, %v170_v53 }
  0xb0   :  { %v199_v0 = vshll.u32 %v196_v59, 16  ;;  %v201_v5 = vshll.u32 %v197_v60, 16  ;;  %v200_v20 = vshrl.u32 %v196_v59, 16  ;;  %v202_v29 = vshrl.u32 %v197_v60, 16 }
  0xb1   :  { %v177_v2 = vshll.u32 %v174_v61, 16  ;;  %v179_v7 = vshll.u32 %v175_v62, 16  ;;  %v178_v27 = vshrl.u32 %v174_v61, 16  ;;  %v180_v31 = vshrl.u32 %v175_v62, 16 }
  0xb2   :  { %vm203_vm7 = vc.u32 %v195_v63, %v199_v0  ;;  %v205_v6 = vadd.s32 %v199_v0, %v195_v63 }
  0xb3   :  { %vm181_vm8 = vc.u32 %v173_v1, %v177_v2  ;;  %v183_v8 = vadd.s32 %v177_v2, %v173_v1  ;;  %v204_v10 = vsel %vm203_vm7, 1, %v517_v9 }
  0xb4   :  { %v182_v13 = vsel %vm181_vm8, 1, %v517_v9  ;;  %v206_v15 = vadd.s32 %v204_v10, %v198_v3  ;;  %vm207_vm9 = vc.u32 %v205_v6, %v201_v5  ;;  %v209_v34 = vadd.s32 %v205_v6, %v201_v5 }
  0xb5   :  { %v184_v17 = vadd.s32 %v182_v13, %v176_v4  ;;  %vm185_vm10 = vc.u32 %v183_v8, %v179_v7  ;;  %v208_v18 = vsel %vm207_vm9, 1, %v517_v9 }
  0xb6   :  { %v186_v19 = vsel %vm185_vm10, 1, %v517_v9  ;;  %v210_v24 = vadd.s32 %v208_v18, %v206_v15 }
  0xb7   :  { %v188_v28 = vadd.s32 %v186_v19, %v184_v17 }
  0xb8   :  { %v211_v30 = vadd.s32 %v210_v24, %v200_v20 }
  0xb9   :  { %v189_v32 = vadd.s32 %v188_v28, %v178_v27  ;;  %v325_v27 = vpop.f32.mrf.mxu2  ;;  %v376_v28 = vld [vmem:[%s634_s5] ss:$0 sm:$0xff] }
  0xba   :  { %v212_v23 = vadd.s32 %v211_v30, %v202_v29 }
  0xbb   :  { %v190_v33 = vadd.s32 %v189_v32, %v180_v31 }
  0xbc   :  { %v216_v35 = vadd.s32 1, %v212_v23 }
  0xbd   :  { %vm215_vm11 = vc.u32 %v190_v33, %v209_v34  ;;  %v214_v48 = vadd.s32 %v209_v34, %v190_v33 }
  0xbe   :  { %v217_v37 = vsel %vm215_vm11, %v216_v35, %v212_v23 }
  0xbf   :  { %v218_v38 = vadd.s32 %v217_v37, %v213_v36 }
  0xc1   :  { %v219_v40 = vadd.s32 536870912, %v218_v38 }
  0xc3   :  { %v220_v41 = vshrl.u32 %v219_v40, 30 }
  0xc5   :  { %v221_v42 = vshll.u32 %v220_v41, 30  ;;  %v244_v61 = vsub.s32 4, %v220_v41 }
  0xc7   :  { %v222_v43 = vsub.s32 %v218_v38, %v221_v42  ;;  %v245_v2 = vsel %vm122_vm14, %v244_v61, %v220_v41 }
  0xc8   :  { %v247_v5 = vsel %vm121_vm15, 0, %v245_v2 }
  0xc9   :  { %vm223_vm12 = vcmp.lt.s32.totalorder %v222_v43, 0  ;;  %v224_v44 = vsub.s32 0, %v222_v43  ;;  %v264_v10 = vadd.s32 3, %v247_v5 }
  0xcb   :  { %v225_v45 = vsel %vm223_vm12, %v224_v44, %v222_v43  ;;  %v265_v16 = vand.u32 3, %v264_v10 }
  0xcc   :  { %v226_v46 = vclz %v225_v45 }
  0xcd   :  { %vm267_vm0 = vcmp.eq.s32.totalorder %v265_v16, 0  ;;  %vm270_vm1 = vcmp.eq.s32.totalorder %v265_v16, 2  ;;  %vm266_vm2 = vcmp.lt.s32.totalorder %v265_v16, 2 }
  0xce   :  { %v356_v47 = vadd.s32 4294967294, %v226_v46 }
  0xd0   :  { %vm357_vm13 = vcmp.lt.s32.totalorder %v356_v47, 0 }
  0xd1   :  { %v229_v21 = vsel %vm357_vm13, 0, %v356_v47 }
  0xd2   :  { %v230_v49 = vsub.s32 32, %v229_v21  ;;  %v234_v50 = vsub.s32 4294967266, %v229_v21  ;;  %v231_v51 = vshll.u32 %v222_v43, %v229_v21 }
  0xd4   :  { %v232_v52 = vshrl.u32 %v214_v48, %v230_v49  ;;  %v235_v39 = vadd.s32 127, %v234_v50 }
  0xd6   :  { %v233_v53 = vor.u32 %v232_v52, %v231_v51  ;;  %v236_v54 = vshll.u32 %v235_v39, 23 }
  0xd8   :  { %v237_v55 = vor.u32 4788187, %v236_v54  ;;  %v240_v57 = vcvt.s32.f32 %v233_v53 }
  0xda   :  { %v238_v56 = vand.u32 2147483647, %v237_v55 }
  0xdc   :  { %v241_v58 = vmul.f32 %v240_v57, %v238_v56 }
  0xde   :  { %v242_v59 = vxor.u32 2147483648, %v241_v58 }
  0xe0   :  { %v243_v60 = vsel %vm122_vm14, %v242_v59, %v241_v58 }
  0xe1   :  { %v246_v62 = vsel %vm121_vm15, %v569_v11, %v243_v60 }
  0xe2   :  { %v248_v63 = vmul.f32 %v246_v62, %v246_v62 }
  0xe4   :  { %v249_v0 = vmul.f32 -0.001358992, %v248_v63  ;;  %v256_v1 = vmul.f32 -0.00019511016, %v248_v63 }
  0xe6   :  { %v250_v3 = vadd.f32 0.041655596, %v249_v0  ;;  %v257_v4 = vadd.f32 0.008332121, %v256_v1 }
  0xe8   :  { %v251_v6 = vmul.f32 %v250_v3, %v248_v63  ;;  %v258_v7 = vmul.f32 %v257_v4, %v248_v63 }
  0xea   :  { %v252_v8 = vadd.f32 -0.4999988, %v251_v6  ;;  %v259_v9 = vadd.f32 -0.16666654, %v258_v7 }
  0xec   :  { %v253_v12 = vmul.f32 %v252_v8, %v248_v63  ;;  %v260_v13 = vmul.f32 %v259_v9, %v248_v63 }
  0xee   :  { %v254_v15 = vadd.f32 1.0, %v253_v12  ;;  %v261_v14 = vadd.f32 1.0, %v260_v13 }
  0xf0   :  { %v262_v17 = vmul.f32 %v261_v14, %v246_v62  ;;  %v271_v18 = vxor.u32 2147483648, %v254_v15 }
  0xf2   :  { %v268_v19 = vxor.u32 2147483648, %v262_v17  ;;  %v272_v24 = vsel %vm270_vm1, %v271_v18, %v262_v17 }
  0xf4   :  { %v269_v20 = vsel %vm267_vm0, %v254_v15, %v268_v19 }
  0xf5   :  { %v273_v25 = vsel %vm266_vm2, %v269_v20, %v272_v24 }
  0xf6   :  { %v274_v26 = vsel %vm263_vm4, nan, %v273_v25 }
  0xf7   :  { %358 = vmatmul.msk.f32.vlgmr.msra.gmra.mxu1 %vm281_vm3, %v274_v26 }
 0x174   :  { %v302_v29 = vpop.f32.mrf.mxu1 }
 0x175   :  { %v326_v30 = vadd.f32 %v325_v27, %v302_v29 }
 0x177   :  { %v332_v31 = vadd.f32 %v376_v28, %v326_v30 }
 0x179   :  { %333 = vst [vmem:[#allocation10] sm:$0xff] %v332_v31 }
 0x17a   :  { %344 = dma.vmem_to_hbm [thread:$0]  %s340_s19, 128, %s342_s22, [#allocation4]  }
 0x17b   :  { %503 = dma.done.wait [#allocation4], 128  }
 0x17c   :  { %504 = vsyncadd [#allocation4], 4294967168 }
 0x17d   :  { %349 = vsyncpa [#allocation3], 1 }
 0x17e   :  { %350 = vsyncpa [#allocation6], 1 }
 0x17f   :  { %351 = vsyncpa [#allocation9], 1 }
 0x180   :  { %352 = vsyncpa [#allocation4], 1 }

</bundles_post_ra>
